<compile_context>
chip_gen: v5e
topology: v5e:2x2
jax: 0.10.0
libtpu: 0.0.40
codegen_flags: <defaults>
</compile_context>

<pallas_src>
import functools

import jax
import jax.numpy as jnp
from jax.experimental import pallas as pl
from jax.experimental.pallas import tpu as pltpu

LANES = 128
TARGET_BLOCK_ROWS = 2048   # 2048 x 128 f32 = 1 MiB per input per block
NCORES = 2                 # reduction split for v7x megacore; harmless on 1-TC chips


def _bce_kernel(p_ref, t_ref, out_ref, *, rows, block_rows, blocks_per_core):
    c = pl.program_id(0)       # TensorCore split ("parallel")
    i = pl.program_id(1)       # reduction-carry axis ("arbitrary")

    @pl.when(i == 0)
    def _():
        out_ref[...] = jnp.zeros_like(out_ref)

    # Cast in-kernel (inputs arrive in native dtype; matches pred.float()).
    p = p_ref[...].astype(jnp.float32)
    t = t_ref[...].astype(jnp.float32)

    # PyTorch BCELoss clamps log outputs at -100 (handles log(0) = -inf).
    log_p = jnp.maximum(jnp.log(p), -100.0)
    log_1mp = jnp.maximum(jnp.log(1.0 - p), -100.0)
    loss = -(t * log_p + (1.0 - t) * log_1mp)

    # Mask rows that fall past the valid data: the ragged last block and any
    # duplicate (clamped) block assigned to the second core read undefined /
    # repeated data, so zero their contribution.  `rows` is a static int.
    block_idx = c * blocks_per_core + i
    row0 = block_idx * block_rows
    global_row = row0 + jax.lax.broadcasted_iota(jnp.int32, loss.shape, 0)
    loss = jnp.where(global_row < rows, loss, 0.0)

    # Lane-parallel partial sum (VPU adds across vregs + one small sublane
    # reduce); accumulate into this core's resident output row.
    out_ref[0] += jnp.sum(loss, axis=0, keepdims=True)


@jax.jit
def bce_loss(pred, true):
    """Mean BCE loss over all elements, matching torch.nn.BCELoss()."""
    n = pred.size                      # static at trace time
    p_flat = pred.reshape(-1)
    t_flat = true.reshape(-1)

    # Only pad when n is not a multiple of 128 (< 128 extra elements).
    # Pad value (p=1, t=1) contributes exactly zero loss.
    lane_pad = (-n) % LANES
    if lane_pad:
        p_flat = jnp.pad(p_flat, (0, lane_pad), constant_values=1.0)
        t_flat = jnp.pad(t_flat, (0, lane_pad), constant_values=1.0)
    rows = (n + lane_pad) // LANES

    block_rows = rows if rows < TARGET_BLOCK_ROWS else TARGET_BLOCK_ROWS
    num_blocks = pl.cdiv(rows, block_rows)
    blocks_per_core = pl.cdiv(num_blocks, NCORES)

    p2d = p_flat.reshape(rows, LANES)
    t2d = t_flat.reshape(rows, LANES)

    # Clamp the block index so the extra block on the second core (when
    # num_blocks is odd or < NCORES) re-reads a valid block; its contribution
    # is zeroed by the in-kernel row mask.
    def idx_map(c, i):
        return (jnp.minimum(c * blocks_per_core + i, num_blocks - 1), 0)

    partial = pl.pallas_call(
        functools.partial(
            _bce_kernel,
            rows=rows,
            block_rows=block_rows,
            blocks_per_core=blocks_per_core,
        ),
        out_shape=jax.ShapeDtypeStruct((NCORES, 1, LANES), jnp.float32),
        grid=(NCORES, blocks_per_core),
        in_specs=[
            pl.BlockSpec((block_rows, LANES), idx_map),
            pl.BlockSpec((block_rows, LANES), idx_map),
        ],
        out_specs=pl.BlockSpec((1, 1, LANES), lambda c, i: (c, 0, 0)),
        compiler_params=pltpu.CompilerParams(
            dimension_semantics=("parallel", "arbitrary"),
        ),
    )(p2d, t2d)

    # Final cross-lane / cross-core reduce and mean on one tiny (2,1,128) slab.
    return jnp.sum(partial) / n


def _bce_ref(pred, true):
    p = pred.astype(jnp.float32)
    t = true.astype(jnp.float32)
    log_p = jnp.maximum(jnp.log(p), -100.0)
    log_1mp = jnp.maximum(jnp.log(1.0 - p), -100.0)
    return jnp.mean(-(t * log_p + (1.0 - t) * log_1mp))


if __name__ == "__main__":
    key = jax.random.PRNGKey(0)
    k1, k2, k3, k4, k5, k6 = jax.random.split(key, 6)

    # 1) Small NCHW f32 inputs (module's expected use): pred in (0,1), 0/1 labels.
    shape = (2, 4, 16, 16)
    pred = jax.nn.sigmoid(jax.random.normal(k1, shape, dtype=jnp.float32))
    true = (jax.random.uniform(k2, shape) > 0.5).astype(jnp.float32)
    out = bce_loss(pred, true)
    jax.block_until_ready(out)
    ref = _bce_ref(pred, true)
    assert jnp.allclose(out, ref, rtol=1e-4, atol=1e-6), (out, ref)

    # 2) Odd size (not a multiple of 128) + bf16 inputs: exercises the tiny
    #    tail pad, the in-kernel cast, and the ragged-block mask.
    shape2 = (3, 5, 7, 11)
    pred2 = jax.nn.sigmoid(jax.random.normal(k3, shape2, dtype=jnp.bfloat16))
    true2 = (jax.random.uniform(k4, shape2) > 0.5).astype(jnp.bfloat16)
    out2 = bce_loss(pred2, true2)
    jax.block_until_ready(out2)
    ref2 = _bce_ref(pred2, true2)
    assert jnp.allclose(out2, ref2, rtol=1e-4, atol=1e-5), (out2, ref2)

    # 3) Multi-block case with an odd block count: exercises the large tiles,
    #    the two-core split, and the clamped duplicate block.
    shape3 = (3, 16, 128, 128)   # 786,432 elems -> 6144 rows -> 3 blocks of 2048
    pred3 = jax.nn.sigmoid(jax.random.normal(k5, shape3, dtype=jnp.float32))
    true3 = (jax.random.uniform(k6, shape3) > 0.5).astype(jnp.float32)
    out3 = bce_loss(pred3, true3)
    jax.block_until_ready(out3)
    ref3 = _bce_ref(pred3, true3)
    assert jnp.allclose(out3, ref3, rtol=1e-4, atol=1e-6), (out3, ref3)

    print("KERNEL_OK")
</pallas_src>

<mosaic_0001>
module attributes {stable_mosaic.version = 11 : i64} {
  func.func @_bce_kernel(%arg0: i32, %arg1: i32, %arg2: memref<16x128xf32, #tpu.memory_space<vmem>>, %arg3: memref<16x128xf32, #tpu.memory_space<vmem>>, %arg4: memref<1x1x128xf32, #tpu.memory_space<vmem>>) attributes {dimension_semantics = [#tpu.dimension_semantics<parallel>, #tpu.dimension_semantics<arbitrary>], iteration_bounds = array<i64: 2, 1>, scalar_prefetch = 0 : i64, scratch_operands = 0 : i64, tpu.core_type = #tpu.core_type<tc>, window_params = [{transform_indices = @transform_0, window_bounds = array<i64: 16, 128>}, {transform_indices = @transform_1, window_bounds = array<i64: 16, 128>}, {transform_indices = @transform_2, window_bounds = array<i64: 1, 1, 128>}]} {
    %c0_i32 = arith.constant 0 : i32
    %0 = arith.cmpi eq, %arg1, %c0_i32 : i32
    %1 = arith.extui %0 : i1 to i32
    %c0_i32_0 = arith.constant 0 : i32
    %2 = arith.cmpi ne, %1, %c0_i32_0 : i32
    scf.if %2 {
      %cst_17 = arith.constant 0.000000e+00 : f32
      %38 = vector.broadcast %cst_17 : f32 to vector<1x1x128xf32>
      %c0_18 = arith.constant 0 : index
      %c0_19 = arith.constant 0 : index
      %c0_20 = arith.constant 0 : index
      %39 = vector.load %arg4[%c0_18, %c0_19, %c0_20] : memref<1x1x128xf32, #tpu.memory_space<vmem>>, vector<1x1x128xf32>
      tpu.vector_store %arg4[%c0_18, %c0_19, %c0_20], %38 {strides = array<i32>} : memref<1x1x128xf32, #tpu.memory_space<vmem>>, vector<1x1x128xf32>,
    } else {
    }
    %c0 = arith.constant 0 : index
    %c0_1 = arith.constant 0 : index
    %3 = vector.load %arg2[%c0, %c0_1] : memref<16x128xf32, #tpu.memory_space<vmem>>, vector<16x128xf32>
    %c0_2 = arith.constant 0 : index
    %c0_3 = arith.constant 0 : index
    %4 = vector.load %arg3[%c0_2, %c0_3] : memref<16x128xf32, #tpu.memory_space<vmem>>, vector<16x128xf32>
    %5 = math.log %3 : vector<16x128xf32>
    %cst = arith.constant -1.000000e+02 : f32
    %6 = vector.broadcast %cst : f32 to vector<16x128xf32>
    %7 = arith.maximumf %5, %6 : vector<16x128xf32>
    %cst_4 = arith.constant 1.000000e+00 : f32
    %8 = vector.broadcast %cst_4 : f32 to vector<16x128xf32>
    %9 = arith.subf %8, %3 : vector<16x128xf32>
    %10 = math.log %9 : vector<16x128xf32>
    %cst_5 = arith.constant -1.000000e+02 : f32
    %11 = vector.broadcast %cst_5 : f32 to vector<16x128xf32>
    %12 = arith.maximumf %10, %11 : vector<16x128xf32>
    %13 = arith.mulf %4, %7 : vector<16x128xf32>
    %cst_6 = arith.constant 1.000000e+00 : f32
    %14 = vector.broadcast %cst_6 : f32 to vector<16x128xf32>
    %15 = arith.subf %14, %4 : vector<16x128xf32>
    %16 = arith.mulf %15, %12 : vector<16x128xf32>
    %17 = arith.addf %13, %16 : vector<16x128xf32>
    %cst_7 = arith.constant 0.000000e+00 : f32
    %18 = vector.broadcast %cst_7 : f32 to vector<16x128xf32>
    %19 = arith.subf %18, %17 : vector<16x128xf32>
    %c1_i32 = arith.constant 1 : i32
    %20 = arith.muli %arg0, %c1_i32 : i32
    %21 = arith.addi %20, %arg1 : i32
    %c16_i32 = arith.constant 16 : i32
    %22 = arith.muli %21, %c16_i32 : i32
    %23 = tpu.iota {dimensions = array<i32: 0>} : vector<16x128xi32>
    %24 = vector.broadcast %22 : i32 to vector<16x128xi32>
    %25 = arith.addi %24, %23 : vector<16x128xi32>
    %c16_i32_8 = arith.constant 16 : i32
    %26 = vector.broadcast %c16_i32_8 : i32 to vector<16x128xi32>
    %27 = arith.cmpi slt, %25, %26 : vector<16x128xi32>
    %cst_9 = arith.constant 0.000000e+00 : f32
    %28 = vector.broadcast %cst_9 : f32 to vector<16x128xf32>
    %29 = arith.select %27, %19, %28 : vector<16x128xi1>, vector<16x128xf32>
    %c0_10 = arith.constant 0 : index
    %c0_11 = arith.constant 0 : index
    %c0_12 = arith.constant 0 : index
    %30 = vector.load %arg4[%c0_10, %c0_11, %c0_12] : memref<1x1x128xf32, #tpu.memory_space<vmem>>, vector<1x1x128xf32>
    %31 = vector.shape_cast %30 : vector<1x1x128xf32> to vector<1x128xf32>
    %cst_13 = arith.constant dense<0.000000e+00> : vector<128xf32>
    %32 = vector.multi_reduction <add>, %29, %cst_13 [0] : vector<16x128xf32> to vector<128xf32>
    %33 = vector.shape_cast %32 : vector<128xf32> to vector<1x128xf32>
    %34 = arith.addf %31, %33 : vector<1x128xf32>
    %c0_14 = arith.constant 0 : index
    %c0_15 = arith.constant 0 : index
    %c0_16 = arith.constant 0 : index
    %35 = vector.load %arg4[%c0_14, %c0_15, %c0_16] : memref<1x1x128xf32, #tpu.memory_space<vmem>>, vector<1x1x128xf32>
    %36 = vector.shape_cast %35 : vector<1x1x128xf32> to vector<1x128xf32>
    %37 = vector.shape_cast %34 : vector<1x128xf32> to vector<1x1x128xf32>
    tpu.vector_store %arg4[%c0_14, %c0_15, %c0_16], %37 {strides = array<i32>} : memref<1x1x128xf32, #tpu.memory_space<vmem>>, vector<1x1x128xf32>,
    return
  }
  func.func @transform_0(%arg0: i32, %arg1: i32) -> (i32, i32) {
    %c1_i32 = arith.constant 1 : i32
    %0 = arith.muli %arg0, %c1_i32 : i32
    %1 = arith.addi %0, %arg1 : i32
    %c0_i32 = arith.constant 0 : i32
    %2 = arith.minsi %1, %c0_i32 : i32
    %c0_i32_0 = arith.constant 0 : i32
    %c0_i32_1 = arith.constant 0 : i32
    return %2, %c0_i32_0 : i32, i32
  }
  func.func @transform_1(%arg0: i32, %arg1: i32) -> (i32, i32) {
    %c1_i32 = arith.constant 1 : i32
    %0 = arith.muli %arg0, %c1_i32 : i32
    %1 = arith.addi %0, %arg1 : i32
    %c0_i32 = arith.constant 0 : i32
    %2 = arith.minsi %1, %c0_i32 : i32
    %c0_i32_0 = arith.constant 0 : i32
    %c0_i32_1 = arith.constant 0 : i32
    return %2, %c0_i32_0 : i32, i32
  }
  func.func @transform_2(%arg0: i32, %arg1: i32) -> (i32, i32, i32) {
    %c0_i32 = arith.constant 0 : i32
    %c0_i32_0 = arith.constant 0 : i32
    %c0_i32_1 = arith.constant 0 : i32
    return %arg0, %c0_i32, %c0_i32_0 : i32, i32, i32
  }
}

</mosaic_0001>

<bundles_post_ra>
// kernel: bce_loss.1
= control target key start
LH: loop header
LB: loop body
LE: loop exit
PB: predicated region body
PF: predicated region fallthrough
CT: control target
= control target key end

     0   :  { %s425_s9 = smov 0   ;;  %s427_s10 = smov 0   ;;  %s473_s0 = inlined_call_operand.vmem [shape: f32[16,128], index: 0, kind: input, shape index: {}]   ;;  %s474_s1 = inlined_call_operand.vmem [shape: f32[16,128], index: 1, kind: input, shape index: {}]   ;;  %s475_s2 = inlined_call_operand.vmem [shape: f32[2,1,128], index: 2, kind: output, shape index: {}]  }
   0x1   :  { %s429_s11 = smov 0  }
   0x2 LB: > { %s24_s12 = sadd.s32 1, %s403_s10  ;;  %p344_p0 = scmp.ge.s32.totalorder %s407_s11, 1  ;;  %s407_s11 = sphi %s429_s11, %s12_s11   ;;  %s403_s10 = sphi %s427_s10, %s477_s10   ;;  %s399_s9 = sphi %s425_s9, %s476_s9  }
   0x3   : > { %p26_p1 = scmp.ge.s32.totalorder %s24_s12, 2  ;;  %p160_p2 = scmp.lt.s32.totalorder %s407_s11, 3 }
   0x5   : > { %s479_s12 = smov (%p26_p1, %s24_s12), 0  ;;  %p161_p3 = pnand %p344_p0, %p160_p2 }
   0x6   : > { %p215_p4 = scmp.lt.s32.totalorder (!%p161_p3), %s399_s9, 1  ;;  %p192_p5 = scmp.lt.s32.totalorder (!%p161_p3), %s399_s9, 0 }
   0x7   : > { %164 = sbr.rel (%p161_p3) target bundleno = 60 (0x3c), region = 28  ;;  %s349_s26 = sshll.u32 (!%p161_p3), %s399_s9, 4 }
   0xc   : > { %s216_s13 = scalar_select %p215_p4, %s399_s9, 1  ;;  %v409_v0 = vmov 0.0   ;;  %v253_v5 = vlaneseq  ;;  %v256_v14 = vstv %s349_s26 }
   0xd   : > { %s193_s14 = scalar_select %p192_p5, %s399_s9, 0 }
   0xe   : > { %s452_s17 = scalar_lea.vmem %s475_s2, %s216_s13  ;;  %v254_v6 = vshrl.u32 %v253_v5, 7 }
   0xf   : > { %222 = vst [vmem:[%s452_s17] sm:$0x1] %v409_v0  ;;  %s345_s18 = sshll.u32 %s193_s14, 1 }
  0x10   : > { %p195_p6 = scmp.lt.s32.totalorder %s345_s18, 1  ;;  %v255_v19 = vadd.s32 8, %v254_v6  ;;  %v257_v27 = vadd.s32 %v256_v14, %v254_v6 }
  0x12   : > { %s481_s18 = smov (!%p195_p6, %s345_s18), 1  ;;  %v258_v29 = vadd.s32 %v256_v14, %v255_v19  ;;  %vm259_vm0 = vcmp.lt.s32.totalorder %v257_v27, 16 }
  0x13   : > { %s346_s19 = sshll.u32 %s481_s18, 3 }
  0x14   : > { %s198_s22 = scalar_lea.vmem %s473_s0, %s346_s19  ;;  %s210_s25 = scalar_lea.vmem %s474_s1, %s346_s19  ;;  %vm260_vm1 = vcmp.lt.s32.totalorder %v258_v29, 16 }
  0x15   : > { %v223_v1 = vld [vmem:[%s198_s22] sm:$0xff]  ;;  %v224_v2 = vld [vmem:[%s198_s22 + $0x8] sm:$0xff] }
  0x16   : > { %377 = vlog2.f32 %v223_v1  ;;  %v233_v3 = vsub.f32 1.0, %v223_v1  ;;  %v234_v4 = vsub.f32 1.0, %v224_v2  ;;  %v225_v8 = vld [vmem:[%s210_s25] sm:$0xff]  ;;  %v226_v10 = vld [vmem:[%s210_s25 + $0x8] sm:$0xff] }
  0x17   : > { %379 = vlog2.f32 %v224_v2  ;;  %v243_v18 = vsub.f32 1.0, %v225_v8  ;;  %v244_v22 = vsub.f32 1.0, %v226_v10  ;;  %v263_v43 = vld [vmem:[%s452_s17] sm:$0x1] }
  0x18   : > { %381 = vlog2.f32 %v233_v3 }
  0x19   : > { %383 = vlog2.f32 %v234_v4 }
  0x1c   : > { %v378_v7 = vpop.eup %377 }
  0x1d   : > { %v380_v9 = vpop.eup %379  ;;  %v228_v11 = vmul.f32 0.6931472, %v378_v7 }
  0x1e   : > { %v382_v12 = vpop.eup %381  ;;  %v230_v13 = vmul.f32 0.6931472, %v380_v9 }
  0x1f   : > { %v384_v15 = vpop.eup %383  ;;  %v231_v16 = vmax.f32 %v228_v11, -100.0  ;;  %v236_v17 = vmul.f32 0.6931472, %v382_v12 }
  0x20   : > { %v232_v20 = vmax.f32 %v230_v13, -100.0  ;;  %v238_v21 = vmul.f32 0.6931472, %v384_v15 }
  0x21   : > { %v239_v23 = vmax.f32 %v236_v17, -100.0  ;;  %v241_v24 = vmul.f32 %v231_v16, %v225_v8 }
  0x22   : > { %v240_v25 = vmax.f32 %v238_v21, -100.0  ;;  %v242_v26 = vmul.f32 %v232_v20, %v226_v10 }
  0x23   : > { %v245_v28 = vmul.f32 %v243_v18, %v239_v23 }
  0x24   : > { %v246_v30 = vmul.f32 %v244_v22, %v240_v25 }
  0x25   : > { %v247_v31 = vadd.f32 %v245_v28, %v241_v24 }
  0x26   : > { %v248_v32 = vadd.f32 %v246_v30, %v242_v26 }
  0x27   : > { %v249_v33 = vsub.f32 0.0, %v247_v31 }
  0x28   : > { %v250_v34 = vsub.f32 0.0, %v248_v32 }
  0x29   : > { %v261_v35 = vsel %vm259_vm0, %v249_v33, 0.0 }
  0x2a   : > { %v262_v36 = vsel %vm260_vm1, %v250_v34, 0.0 }
  0x2b   : > { %v264_v37 = vadd.f32 %v262_v36, %v261_v35 }
  0x2d   : > { %v265_v38 = vrot.slane %v264_v37, 4 }
  0x2f   : > { %v266_v39 = vadd.f32 %v265_v38, %v264_v37 }
  0x31   : > { %v267_v40 = vrot.slane %v266_v39, 2 }
  0x33   : > { %v268_v41 = vadd.f32 %v267_v40, %v266_v39 }
  0x35   : > { %v269_v42 = vrot.slane %v268_v41, 1 }
  0x37   : > { %v270_v44 = vadd.f32 %v269_v42, %v268_v41 }
  0x39   : > { %v271_v45 = vadd.f32 %v270_v44, %v263_v43 }
  0x3b   : > { %272 = vst [vmem:[%s452_s17] sm:$0x1] %v271_v45 }
  0x3c PF: > { %s12_s11 = sadd.s32 1, %s407_s11   ;;  %s476_s9 = smov %s403_s10 }
  0x3d   : > { %p9_p7 = scmp.ge.s32.totalorder %s12_s11, 4   ;;  %s477_s10 = smov %s479_s12 }
  0x3f   :  { %11 = sbr.rel (!%p9_p7) target bundleno = 2 (0x2), region = 65 }

</bundles_post_ra>
